<compile_context>
chip_gen: v7x
topology: tpu7x:2x2x1
jax: 0.10.0
libtpu: 0.0.40
codegen_flags: <defaults>
</compile_context>

<pallas_src>
import numpy as np
import jax
import jax.numpy as jnp
from jax.experimental import pallas as pl
from jax.experimental.pallas import tpu as pltpu


def _round_up(x, m):
    return (x + m - 1) // m * m


# -----------------------------------------------------------------------------
# Pallas kernel: tensorized random-forest predict_proba
# (scaler, branch directions, and 1/n_trees all folded into the operands)
# -----------------------------------------------------------------------------
def make_rf_kernel(depth: int):
    depth_f = float(depth)

    def rf_kernel(xg_ref, thr_ref, anc_ref, leaf_ref, out_ref):
        # Pre-gathered features vs. folded thresholds -> decision bit per node.
        # bit = 1 -> go right (x > thr); sklearn convention x <= thr goes left.
        # Padded node columns have thr=+1e30 -> bit 0; the bias column has
        # thr=-1e30 -> bit 1 (constant-1 column).  Exact 0/1 -> bf16 is lossless.
        bits = (xg_ref[...] > thr_ref[...]).astype(jnp.bfloat16)      # [TN, Mp]

        # Sum-of-agreements: gb[n, leaf] counts the tree levels on which sample n's
        # branch decision agrees with leaf's root-to-leaf path (bias row supplies the
        # per-leaf left-branch count).  All terms are small ints -> exact in f32.
        gb = jnp.dot(bits, anc_ref[...],
                     preferred_element_type=jnp.float32)               # [TN, TLp]

        # Sample reaches the leaf iff it agrees at every one of `depth` levels.
        ind = (gb == depth_f).astype(jnp.float32)                      # exact 0/1

        # Leaf class distributions already carry the 1/n_trees factor.
        out_ref[...] = jnp.dot(ind, leaf_ref[...],
                               preferred_element_type=jnp.float32)     # [TN, Cp]

    return rf_kernel


def rf_predict_proba(xg, thr, anc_sum, leaf, *, depth, n_classes, row_tile=512):
    N, Mp = xg.shape
    TLp, Cp = leaf.shape

    # Row tile: sublane-aligned.  If the batch allows it, force >= 2 grid steps so
    # the "parallel" axis can shard across v7x's two TensorCores (no-op on v5e/v6e).
    Np8 = _round_up(N, 8)
    TN = min(row_tile, Np8)
    if TN == Np8 and Np8 >= 16:
        TN = _round_up((Np8 + 1) // 2, 8)
    Np = _round_up(N, TN)
    if Np != N:
        xg = jnp.pad(xg, ((0, Np - N), (0, 0)))

    flops = 2 * Np * (Mp * TLp + TLp * Cp)
    bytes_accessed = int(Np * Mp * 4                        # gathered x tiles
                         + thr.size * thr.dtype.itemsize
                         + anc_sum.size * anc_sum.dtype.itemsize
                         + leaf.size * leaf.dtype.itemsize
                         + Np * Cp * 4)                     # output

    resident = pl.Buffered(1)   # constant index maps -> single buffer, no perf cost
    out = pl.pallas_call(
        make_rf_kernel(depth),
        out_shape=jax.ShapeDtypeStruct((Np, Cp), jnp.float32),
        grid=(Np // TN,),
        in_specs=[
            pl.BlockSpec((TN, Mp), lambda i: (i, 0)),                  # x (pipelined)
            pl.BlockSpec((1, Mp), lambda i: (0, 0),
                         pipeline_mode=resident),                      # thresholds
            pl.BlockSpec((Mp, TLp), lambda i: (0, 0),
                         pipeline_mode=resident),                      # anc_sum
            pl.BlockSpec((TLp, Cp), lambda i: (0, 0),
                         pipeline_mode=resident),                      # leaf probs
        ],
        out_specs=pl.BlockSpec((TN, Cp), lambda i: (i, 0)),
        compiler_params=pltpu.CompilerParams(
            dimension_semantics=("parallel",)),
        cost_estimate=pl.CostEstimate(
            flops=flops, transcendentals=0, bytes_accessed=bytes_accessed),
    )(xg, thr, anc_sum, leaf)
    return out[:N, :n_classes]


# -----------------------------------------------------------------------------
# Glue: preprocess_data + deterministic synthetic forest parameters
# -----------------------------------------------------------------------------
def preprocess_data_jax(x):
    # NCHW -> NHWC -> [N, F]  (matches the reference preprocess_data)
    if x.ndim == 4:
        N = x.shape[0]
        x = jnp.transpose(x, (0, 2, 3, 1)).reshape(N, -1)
    elif x.ndim == 3:
        N = x.shape[0]
        x = x.reshape(N, -1)
    return x


def build_forest_params(key, n_features, n_trees, depth, n_classes):
    n_nodes = 2 ** depth - 1          # internal nodes per tree
    n_leaves = 2 ** depth             # leaves per tree
    M = n_trees * n_nodes
    TL = n_trees * n_leaves
    Mp = _round_up(M + 1, 128)        # +1 for the constant-1 "bias" column
    TLp = _round_up(TL, 128)
    Cp = _round_up(n_classes, 128)
    bias_col = M

    k_mean, k_scale, k_feat, k_thr, k_leaf = jax.random.split(key, 5)
    mean = np.asarray(jax.random.normal(k_mean, (n_features,), jnp.float32))
    scale = np.asarray(jax.random.uniform(k_scale, (n_features,), jnp.float32,
                                          0.5, 1.5))
    feat_idx = np.asarray(jax.random.randint(
        k_feat, (n_trees, n_nodes), 0, n_features)).reshape(-1).astype(np.int32)
    thr_scaled = np.asarray(jax.random.normal(k_thr, (M,), jnp.float32)) * 0.5
    leaf_raw = np.asarray(jax.random.uniform(
        k_leaf, (TL, n_classes), jnp.float32, 0.1, 1.0))
    leaf = (leaf_raw / leaf_raw.sum(-1, keepdims=True)).astype(np.float32)

    # ---- kernel operands: scaler / directions / 1/T folded, lane-padded ------
    # StandardScaler fold (scale > 0):
    #   ((x - mean)/scale)[f] > thr_scaled   <=>   x[f] > thr_scaled*scale_f + mean_f
    thr_raw = (thr_scaled * scale[feat_idx] + mean[feat_idx]).astype(np.float32)

    feat_idx_p = np.zeros((Mp,), np.int32)            # padded/bias cols gather feat 0
    feat_idx_p[:M] = feat_idx                         # (value irrelevant: thr = +-1e30)
    thr_p = np.full((1, Mp), 1e30, np.float32)        # padded nodes -> bit 0
    thr_p[0, :M] = thr_raw
    thr_p[0, bias_col] = -1e30                        # bias column  -> bit 1

    # Sum-of-agreements matrix [Mp, TLp]:
    #   per level, agreement = dir*b + (1-dir)*(1-b) = b*(2*dir-1) + (1-dir)
    # summed over levels; sample reaches the leaf iff the sum equals `depth`.
    anc_sum = np.zeros((Mp, TLp), np.float32)
    for t in range(n_trees):
        for leaf_i in range(n_leaves):
            col = t * n_leaves + leaf_i
            n_left = 0
            for d in range(depth):
                node = (2 ** d - 1) + (leaf_i >> (depth - d))
                direction = (leaf_i >> (depth - 1 - d)) & 1
                anc_sum[t * n_nodes + node, col] = 2.0 * direction - 1.0
                n_left += 1 - direction
            anc_sum[bias_col, col] = float(n_left)

    leaf_p = np.zeros((TLp, Cp), np.float32)
    leaf_p[:TL, :n_classes] = leaf / np.float32(n_trees)   # fold 1/n_trees

    kernel_params = (feat_idx_p,                                      # int32 [Mp]
                     jnp.asarray(thr_p),                              # f32   [1, Mp]
                     jnp.asarray(anc_sum, dtype=jnp.bfloat16),        # bf16  (exact 0/+-1/small ints)
                     jnp.asarray(leaf_p))                             # f32   [TLp, Cp]
    ref_params = (feat_idx, thr_raw, leaf)
    return kernel_params, ref_params


def reference_forward(x4d, ref_params, *, n_trees, depth, n_classes):
    # Plain numpy tree walk == RandomForestClassifier.predict_proba semantics
    # (scaler folded into the raw-space thresholds, same constants as the kernel,
    #  so the comparison is deterministic under fp rounding).
    feat_idx, thr_raw, leaf = ref_params
    xf = np.asarray(preprocess_data_jax(x4d))
    n_nodes = 2 ** depth - 1
    n_leaves = 2 ** depth
    N = xf.shape[0]
    out = np.zeros((N, n_classes), np.float64)
    for n in range(N):
        for t in range(n_trees):
            node = 0
            for _ in range(depth):
                g = t * n_nodes + node
                go_right = xf[n, feat_idx[g]] > thr_raw[g]
                node = 2 * node + 1 + int(go_right)
            leaf_i = node - n_nodes
            out[n] += leaf[t * n_leaves + leaf_i]
    return out / n_trees


# -----------------------------------------------------------------------------
if __name__ == "__main__":
    N, C, H, W = 8, 4, 16, 16           # NCHW input, like the PyTorch model
    n_features = H * W * C              # 1024
    n_trees, depth, n_classes = 8, 3, 10

    key = jax.random.PRNGKey(0)
    k_x, k_params = jax.random.split(key)
    x = jax.random.normal(k_x, (N, C, H, W), jnp.float32)

    (feat_idx_p, thr_p, anc_sum, leaf_p), rparams = build_forest_params(
        k_params, n_features, n_trees, depth, n_classes)

    # preprocess + static feature gather (replaces the in-kernel one-hot matmul)
    x_flat = preprocess_data_jax(x)                        # [N, F]
    xg = jnp.take(x_flat, jnp.asarray(feat_idx_p), axis=1)  # [N, Mp], f32

    probs = rf_predict_proba(xg, thr_p, anc_sum, leaf_p,
                             depth=depth, n_classes=n_classes)
    probs = jax.block_until_ready(probs)

    # Verify against a plain numpy tree-walk reference; rows of predict_proba sum to 1.
    ref = reference_forward(x, rparams, n_trees=n_trees, depth=depth,
                            n_classes=n_classes)
    assert np.allclose(np.asarray(probs), ref, atol=1e-5, rtol=1e-5)
    assert np.allclose(np.asarray(probs).sum(-1), 1.0, atol=1e-5)

    # TODO(synk): fitting (RandomForestClassifier.fit / StandardScaler.fit) and the
    # pickle-based state_dict are training-time sklearn logic with no Pallas
    # equivalent; only the forward path (transform + predict_proba) is implemented,
    # with synthetic tree parameters.
    print("KERNEL_OK")
</pallas_src>

<mosaic_0001>
module attributes {stable_mosaic.version = 11 : i64} {
  func.func @rf_kernel(%arg0: i32, %arg1: memref<8x128xf32, #tpu.memory_space<vmem>>, %arg2: memref<1x128xf32, #tpu.memory_space<vmem>>, %arg3: memref<128x128xbf16, #tpu.memory_space<vmem>>, %arg4: memref<128x128xf32, #tpu.memory_space<vmem>>, %arg5: memref<8x128xf32, #tpu.memory_space<vmem>>) attributes {dimension_semantics = [#tpu.dimension_semantics<parallel>], iteration_bounds = array<i64: 1>, scalar_prefetch = 0 : i64, scratch_operands = 0 : i64, tpu.core_type = #tpu.core_type<tc>, window_params = [{transform_indices = @transform_0, window_bounds = array<i64: 8, 128>}, {pipeline_mode = #tpu.pipeline_mode<synchronous>, transform_indices = @transform_1, window_bounds = array<i64: 1, 128>}, {pipeline_mode = #tpu.pipeline_mode<synchronous>, transform_indices = @transform_2, window_bounds = array<i64: 128, 128>}, {pipeline_mode = #tpu.pipeline_mode<synchronous>, transform_indices = @transform_3, window_bounds = array<i64: 128, 128>}, {transform_indices = @transform_4, window_bounds = array<i64: 8, 128>}]} {
    %c0 = arith.constant 0 : index
    %c0_0 = arith.constant 0 : index
    %0 = vector.load %arg1[%c0, %c0_0] : memref<8x128xf32, #tpu.memory_space<vmem>>, vector<8x128xf32>
    %c0_1 = arith.constant 0 : index
    %c0_2 = arith.constant 0 : index
    %1 = vector.load %arg2[%c0_1, %c0_2] : memref<1x128xf32, #tpu.memory_space<vmem>>, vector<1x128xf32>
    %2 = vector.broadcast %1 : vector<1x128xf32> to vector<8x128xf32>
    %3 = arith.cmpf ogt, %0, %2 : vector<8x128xf32>
    %4 = arith.extui %3 : vector<8x128xi1> to vector<8x128xi32>
    %5 = arith.sitofp %4 : vector<8x128xi32> to vector<8x128xf32>
    %6 = arith.truncf %5 : vector<8x128xf32> to vector<8x128xbf16>
    %c0_3 = arith.constant 0 : index
    %c0_4 = arith.constant 0 : index
    %7 = vector.load %arg3[%c0_3, %c0_4] : memref<128x128xbf16, #tpu.memory_space<vmem>>, vector<128x128xbf16>
    %cst = arith.constant dense<0.000000e+00> : vector<8x128xf32>
    %8 = tpu.matmul %6, %7, %cst {dimension_numbers = #tpu.dot_dimension_numbers<[1], [0], [0], [1], [0, 0, 1, 1], [], []>} : vector<8x128xbf16>, vector<128x128xbf16>, vector<8x128xf32> -> vector<8x128xf32>
    %cst_5 = arith.constant 3.000000e+00 : f32
    %9 = vector.broadcast %cst_5 : f32 to vector<8x128xf32>
    %10 = arith.cmpf oeq, %8, %9 : vector<8x128xf32>
    %11 = arith.extui %10 : vector<8x128xi1> to vector<8x128xi32>
    %12 = arith.sitofp %11 : vector<8x128xi32> to vector<8x128xf32>
    %c0_6 = arith.constant 0 : index
    %c0_7 = arith.constant 0 : index
    %13 = vector.load %arg4[%c0_6, %c0_7] : memref<128x128xf32, #tpu.memory_space<vmem>>, vector<128x128xf32>
    %cst_8 = arith.constant dense<0.000000e+00> : vector<8x128xf32>
    %14 = tpu.matmul %12, %13, %cst_8 {dimension_numbers = #tpu.dot_dimension_numbers<[1], [0], [0], [1], [0, 0, 1, 1], [], []>} : vector<8x128xf32>, vector<128x128xf32>, vector<8x128xf32> -> vector<8x128xf32>
    %c0_9 = arith.constant 0 : index
    %c0_10 = arith.constant 0 : index
    %15 = vector.load %arg5[%c0_9, %c0_10] : memref<8x128xf32, #tpu.memory_space<vmem>>, vector<8x128xf32>
    tpu.vector_store %arg5[%c0_9, %c0_10], %14 {strides = array<i32>} : memref<8x128xf32, #tpu.memory_space<vmem>>, vector<8x128xf32>,
    return
  }
  func.func @transform_0(%arg0: i32) -> (i32, i32) {
    %c0_i32 = arith.constant 0 : i32
    %c0_i32_0 = arith.constant 0 : i32
    return %arg0, %c0_i32 : i32, i32
  }
  func.func @transform_1(%arg0: i32) -> (i32, i32) {
    %c0_i32 = arith.constant 0 : i32
    %c0_i32_0 = arith.constant 0 : i32
    %c0_i32_1 = arith.constant 0 : i32
    return %c0_i32, %c0_i32_0 : i32, i32
  }
  func.func @transform_2(%arg0: i32) -> (i32, i32) {
    %c0_i32 = arith.constant 0 : i32
    %c0_i32_0 = arith.constant 0 : i32
    %c0_i32_1 = arith.constant 0 : i32
    return %c0_i32, %c0_i32_0 : i32, i32
  }
  func.func @transform_3(%arg0: i32) -> (i32, i32) {
    %c0_i32 = arith.constant 0 : i32
    %c0_i32_0 = arith.constant 0 : i32
    %c0_i32_1 = arith.constant 0 : i32
    return %c0_i32, %c0_i32_0 : i32, i32
  }
  func.func @transform_4(%arg0: i32) -> (i32, i32) {
    %c0_i32 = arith.constant 0 : i32
    %c0_i32_0 = arith.constant 0 : i32
    return %arg0, %c0_i32 : i32, i32
  }
}

</mosaic_0001>

<bundles_post_ra>
// kernel: tpu_custom_call.1
= control target key start
LH: loop header
LB: loop body
LE: loop exit
PB: predicated region body
PF: predicated region fallthrough
CT: control target
= control target key end

     0   :  { %9 = vsyncpa [#allocation3], 0  ;;  %s611_s0 = inlined_call_operand.hbm [shape: f32[8,128], index: 0, kind: input, shape index: {}]   ;;  %s612_s1 = inlined_call_operand.vmem [shape: f32[1,128], index: 1, kind: input, shape index: {}]   ;;  %s613_s2 = inlined_call_operand.hbm [shape: bf16[128,128], index: 2, kind: input, shape index: {}]   ;;  %s614_s3 = inlined_call_operand.hbm [shape: f32[128,128], index: 3, kind: input, shape index: {}]   ;;  %s615_s4 = inlined_call_operand.hbm [shape: f32[8,128], index: 4, kind: output, shape index: {}]  }
   0x1   :  { %10 = vsyncpa [#allocation6], 0 }
   0x2   :  { %11 = vsyncpa [#allocation4], 0  ;;  %s514_s15 = smov [#allocation5]   ;;  %s420_s19 = scalar_lea.hbm %s613_s2, 1024 }
   0x3   :  { %s29_s16 = sshll.u32 %s514_s15, 4  ;;  %p421_p0 = scmp.ne.s32.totalorder %s613_s2, %s420_s19  ;;  %s30_s16 = int_to_ptr.vmem [resolvable:$true] %s29_s16 }
   0x4   :  { %p424_p1 = scmp.lt.u32.totalorder %s420_s19, %s613_s2 }
   0x6   :  { %p426_p2 = pnand %p424_p1, %p421_p0 }
   0x8   :  { %429 = shalt.err (!%p426_p2)
}
   0x9   :  { %s430_s24 = scalar_lea.vmem %s30_s16, 1024  ;;  %p435_p4 = scmp.lt.s32.totalorder %s30_s16, %s30_s16 }
   0xa   :  { %p431_p3 = scmp.ne.s32.totalorder %s30_s16, %s430_s24  ;;  %p436_p5 = scmp.lt.s32.totalorder %s430_s24, %s430_s24 }
   0xc   :  { %p437_p6 = por %p436_p5, %p435_p4 }
   0xe   :  { %p438_p7 = pnand %p437_p6, %p431_p3 }
  0x10   :  { %441 = shalt.err (!%p438_p7)
}
  0x11   :  { %s515_s25 = smov 64   ;;  %s516_s26 = smov 4  }
  0x12   :  { %35 = dma.hbm_to_vmem [thread:$0]  %s613_s2, 1024, %s30_s16, [#allocation6], %s515_s25, %s515_s25, %s516_s26  }
  0x13   :  { %s517_s29 = smov [#allocation2]   ;;  %s518_s5 = smov [#allocation7]  }
  0x14   :  { %s18_s30 = sshll.u32 %s517_s29, 4  ;;  %s41_s6 = sshll.u32 %s518_s5, 4  ;;  %s19_s30 = int_to_ptr.vmem [resolvable:$true] %s18_s30  ;;  %s42_s6 = int_to_ptr.vmem [resolvable:$true] %s41_s6 }
  0x15   :  { %s442_s9 = scalar_lea.hbm %s611_s0, 128 }
  0x16   :  { %p443_p8 = scmp.ne.s32.totalorder %s611_s0, %s442_s9  ;;  %p446_p9 = scmp.lt.u32.totalorder %s442_s9, %s611_s0 }
  0x18   :  { %p448_p10 = pnand %p446_p9, %p443_p8 }
  0x1a   :  { %451 = shalt.err (!%p448_p10)
}
  0x1b   :  { %s452_s2 = scalar_lea.vmem %s19_s30, 128  ;;  %p457_p12 = scmp.lt.s32.totalorder %s19_s30, %s19_s30 }
  0x1c   :  { %p453_p11 = scmp.ne.s32.totalorder %s19_s30, %s452_s2  ;;  %p458_p13 = scmp.lt.s32.totalorder %s452_s2, %s452_s2 }
  0x1e   :  { %p459_p0 = por %p458_p13, %p457_p12 }
  0x20   :  { %p460_p1 = pnand %p459_p0, %p453_p11 }
  0x22   :  { %463 = shalt.err (!%p460_p1)
}
  0x23   :  { %21 = dma.hbm_to_vmem [thread:$0]  %s611_s0, 128, %s19_s30, [#allocation3]  }
  0x24   :  { %s464_s18 = scalar_lea.hbm %s614_s3, 2048 }
  0x25   :  { %p465_p2 = scmp.ne.s32.totalorder %s614_s3, %s464_s18  ;;  %p468_p3 = scmp.lt.u32.totalorder %s464_s18, %s614_s3 }
  0x27   :  { %p470_p4 = pnand %p468_p3, %p465_p2 }
  0x29   :  { %473 = shalt.err (!%p470_p4)
}
  0x2a   :  { %s474_s23 = scalar_lea.vmem %s42_s6, 2048  ;;  %p479_p6 = scmp.lt.s32.totalorder %s42_s6, %s42_s6 }
  0x2b   :  { %p475_p5 = scmp.ne.s32.totalorder %s42_s6, %s474_s23  ;;  %p480_p7 = scmp.lt.s32.totalorder %s474_s23, %s474_s23 }
  0x2d   :  { %p481_p8 = por %p480_p7, %p479_p6 }
  0x2f   :  { %p482_p9 = pnand %p481_p8, %p475_p5 }
  0x31   :  { %485 = shalt.err (!%p482_p9)
}
  0x32   :  { %s519_s0 = smov 128   ;;  %s520_s24 = smov 8  }
  0x33   :  { %47 = dma.hbm_to_vmem [thread:$0]  %s614_s3, 2048, %s42_s6, [#allocation6], %s519_s0, %s519_s0, %s520_s24  }
  0x34   :  { %508 = dma.done.wait [#allocation3], 128  }
  0x35   :  { %509 = vsyncadd [#allocation3], 4294967168 }
  0x36   :  { %510 = dma.done.wait [#allocation6], 3072  }
  0x37   :  { %511 = vsyncadd [#allocation6], 4294964224  ;;  %v521_v0 = vmov 0.0   ;;  %vm522_vm0 = vmmov 0   ;;  %v523_v1 = vmov 0.0|0.0   ;;  %v412_v2 = vld [vmem:[#allocation5] sm:$0xff]  }
  0x38   :  { %320 = vmatprep.subr.bf16.mxu0 %v521_v0  ;;  %336 = vmatprep.mubr.msk.bf16.mxu0 %vm522_vm0, %v521_v0  ;;  %v413_v3 = vld [vmem:[#allocation5 + $0x8] sm:$0xff]   ;;  %v414_v4 = vld [vmem:[#allocation5 + $0x10] sm:$0xff]   ;;  %v177_v5 = vld [vmem:[#allocation7] sm:$0xff]  ;;  %v524_v33 = vmov 1.0|1.0   ;;  %v525_v40 = vmov 1.0  }
  0x39   :  { %375 = vmatprep.subr.bf16.mxu1 %v523_v1  ;;  %372 = vmatprep.mubr.msk.f32.mxu1 %vm522_vm0, %v521_v0  ;;  %v178_v6 = vld [vmem:[#allocation7 + $0x8] sm:$0xff]  ;;  %v179_v7 = vld [vmem:[#allocation7 + $0x10] sm:$0xff]  ;;  %v180_v8 = vld [vmem:[#allocation7 + $0x18] sm:$0xff] }
  0x3a   :  { %321 = vmatpush3.bf16.msra.mxu0 %v412_v2  ;;  %v415_v9 = vld [vmem:[#allocation5 + $0x18] sm:$0xff]   ;;  %v376_v10 = vpack.c.bf16 %v178_v6, %v177_v5  ;;  %v379_v11 = vpack.c.bf16 %v180_v8, %v179_v7  ;;  %v181_v12 = vld [vmem:[#allocation7 + $0x20] sm:$0xff]  ;;  %v182_v13 = vld [vmem:[#allocation7 + $0x28] sm:$0xff] }
  0x3b   :  { %322 = vmatprep.subr.bf16.mxu0 %v521_v0  ;;  %v416_v14 = vld [vmem:[#allocation5 + $0x20] sm:$0xff]   ;;  %v382_v15 = vpack.c.bf16 %v182_v13, %v181_v12  ;;  %v183_v16 = vld [vmem:[#allocation7 + $0x30] sm:$0xff]  ;;  %v184_v17 = vld [vmem:[#allocation7 + $0x38] sm:$0xff] }
  0x3c   :  { %377 = vmatpush3.bf16.msra.mxu1 %v376_v10  ;;  %v417_v18 = vld [vmem:[#allocation5 + $0x28] sm:$0xff]   ;;  %v385_v19 = vpack.c.bf16 %v184_v17, %v183_v16  ;;  %v185_v20 = vld [vmem:[#allocation7 + $0x40] sm:$0xff]  ;;  %v418_v22 = vld [vmem:[#allocation5 + $0x30] sm:$0xff]  }
  0x3d   :  { %378 = vmatprep.subr.bf16.mxu1 %v523_v1  ;;  %v186_v21 = vld [vmem:[#allocation7 + $0x48] sm:$0xff]  ;;  %v58_v23 = vld [vmem:[#allocation2] sm:$0xff]  ;;  %v187_v26 = vld [vmem:[#allocation7 + $0x50] sm:$0xff] }
  0x3e   :  { %323 = vmatpush3.bf16.msra.mxu0 %v413_v3  ;;  %v280_v24 = vld [vmem:[%s612_s1] ss:$0 sm:$0xff]  ;;  %v388_v25 = vpack.c.bf16 %v186_v21, %v185_v20  ;;  %v189_v30 = vld [vmem:[#allocation7 + $0x60] sm:$0xff]  ;;  %v190_v31 = vld [vmem:[#allocation7 + $0x68] sm:$0xff]  ;;  %s526_s1 = smov [#allocation8]  }
  0x3f   :  { %324 = vmatprep.subr.bf16.mxu0 %v521_v0  ;;  %v188_v27 = vld [vmem:[#allocation7 + $0x58] sm:$0xff]  ;;  %vm66_vm1 = vcmp.gt.f32.partialorder %v58_v23, %v280_v24  ;;  %v394_v32 = vpack.c.bf16 %v190_v31, %v189_v30  ;;  %v191_v34 = vld [vmem:[#allocation7 + $0x70] sm:$0xff]  ;;  %s270_s28 = sshll.u32 %s526_s1, 4  ;;  %s271_s28 = int_to_ptr.vmem [resolvable:$true] %s270_s28 }
  0x40   :  { %380 = vmatpush3.bf16.msra.mxu1 %v379_v11  ;;  %v419_v28 = vld [vmem:[#allocation5 + $0x38] sm:$0xff]   ;;  %v391_v29 = vpack.c.bf16 %v188_v27, %v187_v26  ;;  %vm290_vm2 = vmpackc.low %vm66_vm1, %vm66_vm1  ;;  %s486_s29 = scalar_lea.vmem %s271_s28, 128  ;;  %p491_p11 = scmp.lt.s32.totalorder %s271_s28, %s271_s28 }
  0x41   :  { %381 = vmatprep.subr.bf16.mxu1 %v523_v1  ;;  %v192_v35 = vld [vmem:[#allocation7 + $0x78] sm:$0xff]  ;;  %p487_p10 = scmp.ne.s32.totalorder %s271_s28, %s486_s29  ;;  %p492_p12 = scmp.lt.s32.totalorder %s486_s29, %s486_s29 }
  0x42   :  { %325 = vmatpush3.bf16.msra.mxu0 %v414_v4  ;;  %v397_v36 = vpack.c.bf16 %v192_v35, %v191_v34 }
  0x43   :  { %326 = vmatprep.subr.bf16.mxu0 %v521_v0  ;;  %p493_p13 = por %p492_p12, %p491_p11 }
  0x44   :  { %383 = vmatpush3.bf16.msra.mxu1 %v382_v15 }
  0x45   :  { %384 = vmatprep.subr.bf16.mxu1 %v523_v1  ;;  %p494_p0 = pnand %p493_p13, %p487_p10 }
  0x46   :  { %327 = vmatpush3.bf16.msra.mxu0 %v415_v9 }
  0x47   :  { %328 = vmatprep.subr.bf16.mxu0 %v521_v0 }
  0x48   :  { %386 = vmatpush3.bf16.msra.mxu1 %v385_v19 }
  0x49   :  { %387 = vmatprep.subr.bf16.mxu1 %v523_v1 }
  0x4a   :  { %329 = vmatpush3.bf16.msra.mxu0 %v416_v14 }
  0x4b   :  { %330 = vmatprep.subr.bf16.mxu0 %v521_v0 }
  0x4c   :  { %389 = vmatpush3.bf16.msra.mxu1 %v388_v25 }
  0x4d   :  { %390 = vmatprep.subr.bf16.mxu1 %v523_v1 }
  0x4e   :  { %331 = vmatpush3.bf16.msra.mxu0 %v417_v18 }
  0x4f   :  { %332 = vmatprep.subr.bf16.mxu0 %v521_v0 }
  0x50   :  { %392 = vmatpush3.bf16.msra.mxu1 %v391_v29 }
  0x51   :  { %393 = vmatprep.subr.bf16.mxu1 %v523_v1 }
  0x52   :  { %333 = vmatpush3.bf16.msra.mxu0 %v418_v22 }
  0x53   :  { %334 = vmatprep.subr.bf16.mxu0 %v521_v0 }
  0x54   :  { %395 = vmatpush3.bf16.msra.mxu1 %v394_v32 }
  0x55   :  { %396 = vmatprep.subr.bf16.mxu1 %v523_v1 }
  0x56   :  { %335 = vmatpush3.bf16.msra.mxu0 %v419_v28 }
  0x58   :  { %398 = vmatpush3.bf16.msra.mxu1 %v397_v36 }
  0x59   :  { %337 = vmatmul.mubr.msk.bf16.vlgmr.msra.gmra.mrb[0].mxu0 %vm290_vm2, %v524_v33 }
 0x12c   :  { %v168_v37 = vpop.f32.mrb[0].mxu0 }
 0x12d   :  { %vm174_vm3 = vcmp.eq.f32.partialorder %v168_v37, 3.0  ;;  %v338_v38 = vpop.f32.mrb[1].mxu0 }
 0x12e   :  { %v171_v39 = vpop.f32.mrb[2].mxu0  ;;  %373 = vmatmul.mubr.msk.f32.vlgmr.msra.gmra.mrb[0].mxu1 %vm174_vm3, %v525_v40 }
 0x12f   :  { %v339_v41 = vpop.f32.mrb[3].mxu0 }
 0x201   :  { %v259_v42 = vpop.f32.mrb[0].mxu1 }
 0x202   :  { %263 = vst [vmem:[#allocation8] sm:$0xff] %v259_v42  ;;  %v374_v43 = vpop.f32.mrb[1].mxu1 }
 0x203   :  { %497 = shalt.err (!%p494_p0)
}
 0x204   :  { %s498_s6 = scalar_lea.hbm %s615_s4, 128 }
 0x205   :  { %p499_p1 = scmp.ne.s32.totalorder %s615_s4, %s498_s6  ;;  %p502_p2 = scmp.lt.u32.totalorder %s498_s6, %s615_s4 }
 0x207   :  { %p504_p3 = pnand %p502_p2, %p499_p1 }
 0x209   :  { %507 = shalt.err (!%p504_p3)
}
 0x20a   :  { %273 = dma.vmem_to_hbm [thread:$0]  %s271_s28, 128, %s615_s4, [#allocation4]  }
 0x20b   :  { %512 = dma.done.wait [#allocation4], 128  }
 0x20c   :  { %513 = vsyncadd [#allocation4], 4294967168 }
 0x20d   :  { %277 = vsyncpa [#allocation3], 1 }
 0x20e   :  { %278 = vsyncpa [#allocation6], 1 }
 0x20f   :  { %279 = vsyncpa [#allocation4], 1 }

</bundles_post_ra>
